<compile_context>
chip_gen: v5e
topology: v5e:2x2
jax: 0.10.0
libtpu: 0.0.40
codegen_flags: <defaults>
</compile_context>

<pallas_src>
import functools

import jax
import jax.numpy as jnp
from jax.experimental import pallas as pl
from jax.experimental.pallas import tpu as pltpu

_LANE = 128


def _round_up(x, m):
    return (x + m - 1) // m * m


def _conv_bn_relu_kernel(patch_ref, w_ref, gamma_ref, beta_ref, o_ref,
                         sum_ref, sumsq_ref, *, rows_real, eps, relu6):
    """Grid = (2, T). Pass 0: conv + BN stats accumulation. Pass 1: conv + BN + ReLU.

    patch_ref : (TILE_R, K_pad)  bf16  im2col patch tile
    w_ref     : (K_pad,  C_pad)  bf16  flattened conv weights (grid-resident)
    gamma_ref : (1, C_pad) f32,  beta_ref: (1, C_pad) f32
    o_ref     : (TILE_R, C_pad)  f32   lane-dense output tile
    sum_ref / sumsq_ref : (1, C_pad) f32 VMEM scratch, persist across grid steps.
    """
    p = pl.program_id(0)   # 0 = stats sweep, 1 = normalize sweep
    t = pl.program_id(1)   # row-tile index

    @pl.when(jnp.logical_and(p == 0, t == 0))
    def _init():
        sum_ref[...] = jnp.zeros_like(sum_ref)
        sumsq_ref[...] = jnp.zeros_like(sumsq_ref)

    # Single im2col matmul on the MXU: bf16 operands, f32 accumulation.
    acc = jnp.dot(patch_ref[...], w_ref[...], preferred_element_type=jnp.float32)

    @pl.when(p == 0)
    def _stats():
        sum_ref[...] += jnp.sum(acc, axis=0, keepdims=True)
        sumsq_ref[...] += jnp.sum(acc * acc, axis=0, keepdims=True)
        # Placeholder write; overwritten by pass 1 (keeps output buffer defined).
        o_ref[...] = acc.astype(o_ref.dtype)

    @pl.when(p == 1)
    def _normalize():
        inv_n = jnp.float32(1.0 / rows_real)
        mean = sum_ref[...] * inv_n
        var = jnp.maximum(sumsq_ref[...] * inv_n - mean * mean, 0.0)  # biased var
        scale = jax.lax.rsqrt(var + eps) * gamma_ref[...]
        y = (acc - mean) * scale + beta_ref[...]
        y = jnp.maximum(y, 0.0)
        if relu6:
            y = jnp.minimum(y, 6.0)
        o_ref[...] = y.astype(o_ref.dtype)


def conv_bn_relu(x_nchw, weight_oihw, gamma, beta, *, stride=1, padding=0,
                 dilation=1, groups=1, eps=1e-5, relu6=False, tile_rows=256):
    """Forward pass of ConvBnRelu. Input/output are NCHW like the PyTorch module."""
    # TODO(synk): grouped convolution (groups != 1) not implemented in the kernel.
    assert groups == 1, "kernel supports groups=1 only"

    n, c_in, h, w = x_nchw.shape
    c_out, c_in_w, kh, kw = weight_oihw.shape
    assert c_in_w == c_in
    h_out = (h + 2 * padding - dilation * (kh - 1) - 1) // stride + 1
    w_out = (w + 2 * padding - dilation * (kw - 1) - 1) // stride + 1
    rows = n * h_out * w_out
    k_dim = kh * kw * c_in

    # ---- glue: NCHW->NHWC, spatial pad, im2col (stride/dilation folded in) ----
    x = jnp.transpose(x_nchw, (0, 2, 3, 1)).astype(jnp.bfloat16)
    x = jnp.pad(x, ((0, 0), (padding, padding), (padding, padding), (0, 0)))
    cols = []
    for i in range(kh):
        for j in range(kw):
            r0, c0 = i * dilation, j * dilation
            cols.append(x[:, r0:r0 + (h_out - 1) * stride + 1:stride,
                             c0:c0 + (w_out - 1) * stride + 1:stride, :])
    patches = jnp.concatenate(cols, axis=-1).reshape(rows, k_dim)

    # OIHW -> (kh, kw, cin, cout) -> (kh*kw*cin, cout): matches im2col ordering.
    wmat = jnp.transpose(weight_oihw, (2, 3, 1, 0)).reshape(k_dim, c_out)
    wmat = wmat.astype(jnp.bfloat16)

    # ---- pad to lane/sublane-friendly shapes (zero padding is stats-neutral) ----
    k_pad = _round_up(k_dim, _LANE)
    c_pad = _round_up(c_out, _LANE)
    tile_r = min(tile_rows, _round_up(rows, 8))
    r_pad = _round_up(rows, tile_r)

    patches = jnp.pad(patches, ((0, r_pad - rows), (0, k_pad - k_dim)))
    wmat = jnp.pad(wmat, ((0, k_pad - k_dim), (0, c_pad - c_out)))
    gamma_p = jnp.pad(gamma.astype(jnp.float32).reshape(1, c_out),
                      ((0, 0), (0, c_pad - c_out)))
    beta_p = jnp.pad(beta.astype(jnp.float32).reshape(1, c_out),
                     ((0, 0), (0, c_pad - c_out)))

    num_tiles = r_pad // tile_r
    kernel = functools.partial(_conv_bn_relu_kernel,
                               rows_real=rows, eps=eps, relu6=relu6)

    out = pl.pallas_call(
        kernel,
        out_shape=jax.ShapeDtypeStruct((r_pad, c_pad), jnp.float32),
        grid_spec=pltpu.PrefetchScalarGridSpec(
            num_scalar_prefetch=0,
            grid=(2, num_tiles),                       # (pass, row-tile)
            in_specs=[
                pl.BlockSpec((tile_r, k_pad), lambda p, t: (t, 0)),   # patches
                pl.BlockSpec((k_pad, c_pad), lambda p, t: (0, 0)),    # weights
                pl.BlockSpec((1, c_pad), lambda p, t: (0, 0)),        # gamma
                pl.BlockSpec((1, c_pad), lambda p, t: (0, 0)),        # beta
            ],
            out_specs=pl.BlockSpec((tile_r, c_pad), lambda p, t: (t, 0)),
            scratch_shapes=[pltpu.VMEM((1, c_pad), jnp.float32),      # sum
                            pltpu.VMEM((1, c_pad), jnp.float32)],     # sumsq
        ),
        compiler_params=pltpu.CompilerParams(
            dimension_semantics=("arbitrary", "arbitrary"),
            vmem_limit_bytes=32 * 1024 * 1024),
    )(patches, wmat, gamma_p, beta_p)

    out = out[:rows, :c_out].reshape(n, h_out, w_out, c_out)
    return jnp.transpose(out, (0, 3, 1, 2)).astype(x_nchw.dtype)   # NHWC -> NCHW


def _reference(x_nchw, weight_oihw, gamma, beta, *, padding, eps, relu6):
    """Pure-JAX f32 reference (lax conv + batch-stat BN + relu)."""
    y = jax.lax.conv_general_dilated(
        x_nchw, weight_oihw, window_strides=(1, 1),
        padding=[(padding, padding), (padding, padding)],
        dimension_numbers=("NCHW", "OIHW", "NCHW"))
    mean = jnp.mean(y, axis=(0, 2, 3), keepdims=True)
    var = jnp.mean((y - mean) ** 2, axis=(0, 2, 3), keepdims=True)
    y = (y - mean) * jax.lax.rsqrt(var + eps)
    y = y * gamma[None, :, None, None] + beta[None, :, None, None]
    y = jnp.maximum(y, 0.0)
    if relu6:
        y = jnp.minimum(y, 6.0)
    return y


if __name__ == "__main__":
    # Module config: ConvBnRelu(in_channels=4, out_channels=8, kernel_size=3,
    #                           stride=1, padding=1, relu6=False)
    N, C_IN, H, W = 2, 4, 16, 16
    C_OUT, K = 8, 3
    PADDING = 1
    RELU6 = False

    key = jax.random.PRNGKey(0)
    kx, kw_, kg, kb = jax.random.split(key, 4)
    x = jax.random.normal(kx, (N, C_IN, H, W), dtype=jnp.float32)
    weight = jax.random.normal(kw_, (C_OUT, C_IN, K, K), dtype=jnp.float32) * 0.1
    gamma = 1.0 + 0.1 * jax.random.normal(kg, (C_OUT,), dtype=jnp.float32)
    beta = 0.1 * jax.random.normal(kb, (C_OUT,), dtype=jnp.float32)

    out = conv_bn_relu(x, weight, gamma, beta, stride=1, padding=PADDING,
                       eps=1e-5, relu6=RELU6)
    out = jax.block_until_ready(out)

    ref = _reference(x, weight, gamma, beta, padding=PADDING, eps=1e-5, relu6=RELU6)
    assert out.shape == (N, C_OUT, H, W)
    # bf16 MXU operands (f32 accumulation) -> slightly looser tolerance than pure f32.
    assert jnp.allclose(out, ref, atol=5e-2, rtol=5e-2), "mismatch vs reference"

    print("KERNEL_OK")
</pallas_src>

<mosaic_0001>
module attributes {stable_mosaic.version = 11 : i64} {
  func.func @_conv_bn_relu_kernel(%arg0: i32, %arg1: i32, %arg2: memref<256x128xbf16, #tpu.memory_space<vmem>>, %arg3: memref<128x128xbf16, #tpu.memory_space<vmem>>, %arg4: memref<1x128xf32, #tpu.memory_space<vmem>>, %arg5: memref<1x128xf32, #tpu.memory_space<vmem>>, %arg6: memref<256x128xf32, #tpu.memory_space<vmem>>, %arg7: memref<1x128xf32, #tpu.memory_space<vmem>>, %arg8: memref<1x128xf32, #tpu.memory_space<vmem>>) attributes {dimension_semantics = [#tpu.dimension_semantics<arbitrary>, #tpu.dimension_semantics<arbitrary>], iteration_bounds = array<i64: 2, 2>, scalar_prefetch = 0 : i64, scratch_operands = 2 : i64, tpu.core_type = #tpu.core_type<tc>, window_params = [{transform_indices = @transform_0, window_bounds = array<i64: 256, 128>}, {pipeline_mode = #tpu.pipeline_mode<synchronous>, transform_indices = @transform_1, window_bounds = array<i64: 128, 128>}, {pipeline_mode = #tpu.pipeline_mode<synchronous>, transform_indices = @transform_2, window_bounds = array<i64: 1, 128>}, {pipeline_mode = #tpu.pipeline_mode<synchronous>, transform_indices = @transform_3, window_bounds = array<i64: 1, 128>}, {transform_indices = @transform_4, window_bounds = array<i64: 256, 128>}]} {
    %c0_i32 = arith.constant 0 : i32
    %0 = arith.cmpi eq, %arg0, %c0_i32 : i32
    %c0_i32_0 = arith.constant 0 : i32
    %1 = arith.cmpi eq, %arg1, %c0_i32_0 : i32
    %2 = arith.andi %0, %1 : i1
    %3 = arith.extui %2 : i1 to i32
    %c0_i32_1 = arith.constant 0 : i32
    %4 = arith.cmpi ne, %3, %c0_i32_1 : i32
    scf.if %4 {
      %cst_8 = arith.constant 0.000000e+00 : f32
      %14 = vector.broadcast %cst_8 : f32 to vector<1x128xf32>
      %c0_9 = arith.constant 0 : index
      %c0_10 = arith.constant 0 : index
      %15 = vector.load %arg7[%c0_9, %c0_10] : memref<1x128xf32, #tpu.memory_space<vmem>>, vector<1x128xf32>
      tpu.vector_store %arg7[%c0_9, %c0_10], %14 {strides = array<i32>} : memref<1x128xf32, #tpu.memory_space<vmem>>, vector<1x128xf32>,
      %cst_11 = arith.constant 0.000000e+00 : f32
      %16 = vector.broadcast %cst_11 : f32 to vector<1x128xf32>
      %c0_12 = arith.constant 0 : index
      %c0_13 = arith.constant 0 : index
      %17 = vector.load %arg8[%c0_12, %c0_13] : memref<1x128xf32, #tpu.memory_space<vmem>>, vector<1x128xf32>
      tpu.vector_store %arg8[%c0_12, %c0_13], %16 {strides = array<i32>} : memref<1x128xf32, #tpu.memory_space<vmem>>, vector<1x128xf32>,
    } else {
    }
    %c0 = arith.constant 0 : index
    %c0_2 = arith.constant 0 : index
    %5 = vector.load %arg2[%c0, %c0_2] : memref<256x128xbf16, #tpu.memory_space<vmem>>, vector<256x128xbf16>
    %c0_3 = arith.constant 0 : index
    %c0_4 = arith.constant 0 : index
    %6 = vector.load %arg3[%c0_3, %c0_4] : memref<128x128xbf16, #tpu.memory_space<vmem>>, vector<128x128xbf16>
    %cst = arith.constant dense<0.000000e+00> : vector<256x128xf32>
    %7 = tpu.matmul %5, %6, %cst {dimension_numbers = #tpu.dot_dimension_numbers<[1], [0], [0], [1], [0, 0, 1, 1], [], []>} : vector<256x128xbf16>, vector<128x128xbf16>, vector<256x128xf32> -> vector<256x128xf32>
    %c0_i32_5 = arith.constant 0 : i32
    %8 = arith.cmpi eq, %arg0, %c0_i32_5 : i32
    %9 = arith.extui %8 : i1 to i32
    %c0_i32_6 = arith.constant 0 : i32
    %10 = arith.cmpi ne, %9, %c0_i32_6 : i32
    scf.if %10 {
      %c0_8 = arith.constant 0 : index
      %c0_9 = arith.constant 0 : index
      %14 = vector.load %arg7[%c0_8, %c0_9] : memref<1x128xf32, #tpu.memory_space<vmem>>, vector<1x128xf32>
      %cst_10 = arith.constant dense<0.000000e+00> : vector<128xf32>
      %15 = vector.multi_reduction <add>, %7, %cst_10 [0] : vector<256x128xf32> to vector<128xf32>
      %16 = vector.shape_cast %15 : vector<128xf32> to vector<1x128xf32>
      %17 = arith.addf %14, %16 : vector<1x128xf32>
      %c0_11 = arith.constant 0 : index
      %c0_12 = arith.constant 0 : index
      %18 = vector.load %arg7[%c0_11, %c0_12] : memref<1x128xf32, #tpu.memory_space<vmem>>, vector<1x128xf32>
      tpu.vector_store %arg7[%c0_11, %c0_12], %17 {strides = array<i32>} : memref<1x128xf32, #tpu.memory_space<vmem>>, vector<1x128xf32>,
      %c0_13 = arith.constant 0 : index
      %c0_14 = arith.constant 0 : index
      %19 = vector.load %arg8[%c0_13, %c0_14] : memref<1x128xf32, #tpu.memory_space<vmem>>, vector<1x128xf32>
      %20 = arith.mulf %7, %7 : vector<256x128xf32>
      %cst_15 = arith.constant dense<0.000000e+00> : vector<128xf32>
      %21 = vector.multi_reduction <add>, %20, %cst_15 [0] : vector<256x128xf32> to vector<128xf32>
      %22 = vector.shape_cast %21 : vector<128xf32> to vector<1x128xf32>
      %23 = arith.addf %19, %22 : vector<1x128xf32>
      %c0_16 = arith.constant 0 : index
      %c0_17 = arith.constant 0 : index
      %24 = vector.load %arg8[%c0_16, %c0_17] : memref<1x128xf32, #tpu.memory_space<vmem>>, vector<1x128xf32>
      tpu.vector_store %arg8[%c0_16, %c0_17], %23 {strides = array<i32>} : memref<1x128xf32, #tpu.memory_space<vmem>>, vector<1x128xf32>,
      %c0_18 = arith.constant 0 : index
      %c0_19 = arith.constant 0 : index
      %25 = vector.load %arg6[%c0_18, %c0_19] : memref<256x128xf32, #tpu.memory_space<vmem>>, vector<256x128xf32>
      tpu.vector_store %arg6[%c0_18, %c0_19], %7 {strides = array<i32>} : memref<256x128xf32, #tpu.memory_space<vmem>>, vector<256x128xf32>,
    } else {
    }
    %c1_i32 = arith.constant 1 : i32
    %11 = arith.cmpi eq, %arg0, %c1_i32 : i32
    %12 = arith.extui %11 : i1 to i32
    %c0_i32_7 = arith.constant 0 : i32
    %13 = arith.cmpi ne, %12, %c0_i32_7 : i32
    scf.if %13 {
      %c0_8 = arith.constant 0 : index
      %c0_9 = arith.constant 0 : index
      %14 = vector.load %arg7[%c0_8, %c0_9] : memref<1x128xf32, #tpu.memory_space<vmem>>, vector<1x128xf32>
      %cst_10 = arith.constant 0.001953125 : f32
      %15 = vector.broadcast %cst_10 : f32 to vector<1x128xf32>
      %16 = arith.mulf %14, %15 : vector<1x128xf32>
      %c0_11 = arith.constant 0 : index
      %c0_12 = arith.constant 0 : index
      %17 = vector.load %arg8[%c0_11, %c0_12] : memref<1x128xf32, #tpu.memory_space<vmem>>, vector<1x128xf32>
      %cst_13 = arith.constant 0.001953125 : f32
      %18 = vector.broadcast %cst_13 : f32 to vector<1x128xf32>
      %19 = arith.mulf %17, %18 : vector<1x128xf32>
      %20 = arith.mulf %16, %16 : vector<1x128xf32>
      %21 = arith.subf %19, %20 : vector<1x128xf32>
      %cst_14 = arith.constant 0.000000e+00 : f32
      %22 = vector.broadcast %cst_14 : f32 to vector<1x128xf32>
      %23 = arith.maximumf %21, %22 : vector<1x128xf32>
      %cst_15 = arith.constant 9.99999974E-6 : f32
      %24 = vector.broadcast %cst_15 : f32 to vector<1x128xf32>
      %25 = arith.addf %23, %24 : vector<1x128xf32>
      %26 = math.rsqrt %25 : vector<1x128xf32>
      %c0_16 = arith.constant 0 : index
      %c0_17 = arith.constant 0 : index
      %27 = vector.load %arg4[%c0_16, %c0_17] : memref<1x128xf32, #tpu.memory_space<vmem>>, vector<1x128xf32>
      %28 = arith.mulf %26, %27 : vector<1x128xf32>
      %29 = vector.broadcast %16 : vector<1x128xf32> to vector<256x128xf32>
      %30 = arith.subf %7, %29 : vector<256x128xf32>
      %31 = vector.broadcast %28 : vector<1x128xf32> to vector<256x128xf32>
      %32 = arith.mulf %30, %31 : vector<256x128xf32>
      %c0_18 = arith.constant 0 : index
      %c0_19 = arith.constant 0 : index
      %33 = vector.load %arg5[%c0_18, %c0_19] : memref<1x128xf32, #tpu.memory_space<vmem>>, vector<1x128xf32>
      %34 = vector.broadcast %33 : vector<1x128xf32> to vector<256x128xf32>
      %35 = arith.addf %32, %34 : vector<256x128xf32>
      %cst_20 = arith.constant 0.000000e+00 : f32
      %36 = vector.broadcast %cst_20 : f32 to vector<256x128xf32>
      %37 = arith.maximumf %35, %36 : vector<256x128xf32>
      %c0_21 = arith.constant 0 : index
      %c0_22 = arith.constant 0 : index
      %38 = vector.load %arg6[%c0_21, %c0_22] : memref<256x128xf32, #tpu.memory_space<vmem>>, vector<256x128xf32>
      tpu.vector_store %arg6[%c0_21, %c0_22], %37 {strides = array<i32>} : memref<256x128xf32, #tpu.memory_space<vmem>>, vector<256x128xf32>,
    } else {
    }
    return
  }
  func.func @transform_0(%arg0: i32, %arg1: i32) -> (i32, i32) {
    %c0_i32 = arith.constant 0 : i32
    %c0_i32_0 = arith.constant 0 : i32
    return %arg1, %c0_i32 : i32, i32
  }
  func.func @transform_1(%arg0: i32, %arg1: i32) -> (i32, i32) {
    %c0_i32 = arith.constant 0 : i32
    %c0_i32_0 = arith.constant 0 : i32
    %c0_i32_1 = arith.constant 0 : i32
    return %c0_i32, %c0_i32_0 : i32, i32
  }
  func.func @transform_2(%arg0: i32, %arg1: i32) -> (i32, i32) {
    %c0_i32 = arith.constant 0 : i32
    %c0_i32_0 = arith.constant 0 : i32
    %c0_i32_1 = arith.constant 0 : i32
    return %c0_i32, %c0_i32_0 : i32, i32
  }
  func.func @transform_3(%arg0: i32, %arg1: i32) -> (i32, i32) {
    %c0_i32 = arith.constant 0 : i32
    %c0_i32_0 = arith.constant 0 : i32
    %c0_i32_1 = arith.constant 0 : i32
    return %c0_i32, %c0_i32_0 : i32, i32
  }
  func.func @transform_4(%arg0: i32, %arg1: i32) -> (i32, i32) {
    %c0_i32 = arith.constant 0 : i32
    %c0_i32_0 = arith.constant 0 : i32
    return %arg1, %c0_i32 : i32, i32
  }
}

</mosaic_0001>

<bundles_post_ra>
// kernel: tpu_custom_call.1
= control target key start
LH: loop header
LB: loop body
LE: loop exit
PB: predicated region body
PF: predicated region fallthrough
CT: control target
= control target key end

     0   :  { %s2041_s0 = inlined_call_operand.hbm [shape: bf16[512,128], index: 0, kind: input, shape index: {}]   ;;  %s2042_s1 = inlined_call_operand.hbm [shape: bf16[128,128], index: 1, kind: input, shape index: {}]   ;;  %s2043_s2 = inlined_call_operand.vmem [shape: f32[1,128], index: 2, kind: input, shape index: {}]   ;;  %s2044_s3 = inlined_call_operand.vmem [shape: f32[1,128], index: 3, kind: input, shape index: {}]   ;;  %s2045_s4 = inlined_call_operand.hbm [shape: f32[512,128], index: 4, kind: output, shape index: {}]  }
   0x1   :  { %2050 = sst [smem:[#allocation16_spill]] %s2042_s1 }
   0x2   :  { %9 = vsyncpa [#allocation5], 0 }
   0x3   :  { %11 = vsyncpa [#allocation5 + $0x1], 0 }
   0x4   :  { %12 = vsyncpa [#allocation8], 0 }
   0x5   :  { %13 = vsyncpa [#allocation6], 0 }
   0x6   :  { %15 = vsyncpa [#allocation6 + $0x1], 0  ;;  %s1446_s15 = smov 0   ;;  %s1448_s16 = smov 0  }
   0x7   :  { %s1450_s17 = smov 0   ;;  %s1452_s18 = smov 0  }
   0x8   :  { %s1454_s19 = smov 0   ;;  %s1456_s20 = smov 0  }
   0x9   :  { %s1458_s21 = smov 0   ;;  %s1460_s22 = smov 0  }
   0xa LB: > { %2051 = sst [smem:[#allocation13_spill]] %s1409_s21  ;;  %s989_s23 = sadd.s32 4294967295, %s1413_s22   ;;  %s1413_s22 = sphi %s1460_s22, %s21_s22   ;;  %s1409_s21 = sphi %s1458_s21, %s2066_s21   ;;  %s1405_s20 = sphi %s1456_s20, %s2071_s20   ;;  %s1401_s19 = sphi %s1454_s19, %s2064_s19   ;;  %s1397_s18 = sphi %s1452_s18, %s2070_s18   ;;  %s1393_s17 = sphi %s1450_s17, %s2069_s17   ;;  %s1389_s16 = sphi %s1448_s16, %s2068_s16   ;;  %s1385_s15 = sphi %s1446_s15, %s2067_s15  }
   0xb   : > { %s990_s24 = sadd.s32 4294967294, %s1413_s22   ;;  %p53_p0 = scmp.ne.s32.totalorder %s1389_s16, %s1385_s15 }
   0xc   : > { %p1490_p1 = scmp.eq.s32.totalorder %s989_s23, 0  ;;  %p1494_p2 = scmp.eq.s32.totalorder %s989_s23, 3 }
   0xd   : > { %p146_p3 = scmp.eq.s32.totalorder %s990_s24, 3  ;;  %p991_p5 = scmp.ge.s32.totalorder %s1413_s22, 1 }
   0xe   : > { %p1500_p4 = por %p1490_p1, %p53_p0  ;;  %p153_p7 = scmp.lt.s32.totalorder %s1413_s22, 5 }
   0xf   : > { %p1505_p6 = por %p146_p3, %p53_p0  ;;  %s2056_s1 = sld [smem:[#allocation16_spill]] }
  0x10   : > { %p1513_p8 = pnand %p991_p5, %p153_p7  ;;  %s1415_s7 = smov [#allocation7]  }
  0x11   : > { %s166_s8 = sshll.u32 %s1415_s7, 4  ;;  %s2046_s9 = smov 64   ;;  %s167_s8 = int_to_ptr.vmem [resolvable:$true] %s166_s8 }
  0x12   : > { %p1162_p9 = pneg %p1513_p8  ;;  %s2047_s10 = smov 4  }
  0x13   : > { %s30_s11 = sadd.s32 1, %s1405_s20  ;;  %s33_s12 = sadd.s32 1, %s1409_s21 }
  0x14   : > { %p1163_p10 = pnand %p1162_p9, %p1490_p1  ;;  %p31_p11 = scmp.ge.s32.totalorder %s30_s11, 2 }
  0x15   : > { %s164_s5 = sshll.u32 %s2056_s1, 4  ;;  %s40_s13 = sadd.s32 1, %s1393_s17  ;;  %s165_s5 = int_to_ptr.hbm [resolvable:$true] %s164_s5 }
  0x16   : > { %1165 = dma.hbm_to_vmem [thread:$0]  (!%p1163_p10), %s165_s5, 1024, %s167_s8, [#allocation8], %s2046_s9, %s2046_s9, %s2047_s10  }
  0x17   : > { %p47_p12 = scmp.ne.s32.totalorder %s1393_s17, %s1389_s16  ;;  %s2073_s11 = smov (%p31_p11, %s30_s11), 0 }
  0x18   : > { %2058 = sst [smem:[#allocation14_spill]] %s2073_s11  ;;  %s2075_s12 = smov (!%p31_p11, %s33_s12), %s1409_s21 }
  0x19   : > { %s37_s14 = ssub.s32 %s1405_s20, %s2073_s11  ;;  %p48_p13 = scmp.eq.s32.totalorder %s1413_s22, 0 }
  0x1a   : > { %p35_p0 = scmp.ge.s32.totalorder %s2075_s12, 2  ;;  %p38_p3 = scmp.eq.s32.totalorder %s37_s14, 0 }
  0x1b   : > { %p1535_p5 = por %p48_p13, %p47_p12  ;;  %p1541_p7 = por %p1494_p2, %p47_p12 }
  0x1c   : > { %s2077_s12 = smov (%p35_p0, %s2075_s12), 0  ;;  %p1175_p9 = scmp.lt.s32.totalorder %s1413_s22, 4 }
  0x1d   : > { %2061 = sst [smem:[#allocation15_spill]] %s2077_s12  ;;  %s186_s30 = sand.u32 1, %s1393_s17  }
  0x1e   : > { %s1548_s29 = scalar_select %p38_p3, %s1393_s17, %s40_s13  }
  0x1f   : > { %s994_s5 = sshll.u32 %s186_s30, 7  ;;  %s1104_s7 = sshll.u32 %s1405_s20, 7 }
  0x20   : > { %s195_s9 = scalar_lea.hbm %s2041_s0, %s1104_s7  ;;  %s190_s10 = scalar_lea.vmem [#allocation4], %s994_s5 }
  0x21   : > { %s198_s1 = sshll.u32 %s190_s10, 4  ;;  %s196_s26 = sshll.u32 %s195_s9, 4  ;;  %s199_s1 = int_to_ptr.vmem [resolvable:$true] %s198_s1  ;;  %s197_s26 = int_to_ptr.hbm [resolvable:$true] %s196_s26 }
  0x22   : > { %p1167_p2 = pnand %p1175_p9, %p1535_p5  ;;  %s187_s11 = scalar_lea.sflag [#allocation5], %s186_s30 }
  0x23   : > { %s2062_s21 = smov 4   ;;  %s2063_s12 = smov 64  }
  0x24   : > { %1169 = dma.hbm_to_vmem [thread:$0]  (!%p1167_p2), %s197_s26, 2048, %s199_s1, %s187_s11, %s2063_s12, %s2063_s12, %s2062_s21  }
  0x25   : > { %210 = sbr.rel (%p1513_p8) target bundleno = 452 (0x1c4), region = 36  ;;  %s1564_s13 = sand.u32 (!%p1513_p8), 1, %s1389_s16  }
  0x26   : > { %s998_s10 = sshll.u32 (!%p1513_p8), %s1564_s13, 7  ;;  %s213_s9 = scalar_lea.sflag (!%p1513_p8), [#allocation5], %s1564_s13 }
  0x27   : > { %s1568_s5 = scalar_lea.vmem (!%p1513_p8), [#allocation4], %s998_s10 }
  0x2a   : > { %1372 = dma.done.wait (%p1500_p4), %s213_s9, 2048  }
  0x2b   : > { %1374 = vsyncadd (%p1500_p4), %s213_s9, 4294965248 }
  0x2c   : > { %1376 = dma.done.wait (%p1490_p1), [#allocation8], 1024  }
  0x2d   : > { %1378 = vsyncadd (%p1490_p1), [#allocation8], 4294966272  ;;  %s1000_s1 = sshll.u32 %s1564_s13, 8  ;;  %p249_p8 = scmp.eq.s32.totalorder %s1401_s19, 0 }
  0x2e   : > { %p250_p10 = scmp.eq.s32.totalorder %s1397_s18, 0  ;;  %s1581_s21 = scalar_lea.vmem [#allocation9], %s1000_s1 }
  0x30   : > { %p251_p11 = pnand %p250_p10, %p249_p8 }
  0x32   : > { %254 = sbr.rel (%p251_p11) target bundleno = 58 (0x3a), region = 48 }
  0x37   : > { %v1418_v0 = vmov 0.0  }
  0x38   : > { %255 = vst [vmem:[#allocation2] sm:$0x1] %v1418_v0 }
  0x39   : > { %256 = vst [vmem:[#allocation3] sm:$0x1] %v1418_v0 }
  0x3a PF: > { %v1128_v1 = vld [vmem:[#allocation7 + $0x38] sm:$0xff]  ;;  %v1127_v2 = vld [vmem:[#allocation7 + $0x30] sm:$0xff]  ;;  %v1126_v3 = vld [vmem:[#allocation7 + $0x28] sm:$0xff]  ;;  %p1097_p1 = scmp.ne.s32.totalorder %s1401_s19, 0 }
  0x3b   : > { %449 = vmatpush.bf16.msra.mxu0 %v1128_v1  ;;  %1130 = vmatpush.bf16.msra.mxu1 %v1128_v1  ;;  %v1125_v4 = vld [vmem:[#allocation7 + $0x20] sm:$0xff]  ;;  %v1124_v5 = vld [vmem:[#allocation7 + $0x18] sm:$0xff]  ;;  %v1123_v6 = vld [vmem:[#allocation7 + $0x10] sm:$0xff] }
  0x3c   : > { %1131 = vmatpush.bf16.msra.mxu2 %v1128_v1  ;;  %1132 = vmatpush.bf16.msra.mxu3 %v1128_v1  ;;  %v1122_v7 = vld [vmem:[#allocation7 + $0x8] sm:$0xff]  ;;  %v1121_v8 = vld [vmem:[#allocation7] sm:$0xff]  ;;  %v1107_v17 = vld [vmem:[%s1568_s5 + $0x10] sm:$0xff] }
  0x3d   : > { %v1105_v9 = vld [vmem:[%s1568_s5] sm:$0xff]  ;;  %v1106_v13 = vld [vmem:[%s1568_s5 + $0x8] sm:$0xff]  ;;  %v1111_v18 = vld [vmem:[%s1568_s5 + $0x30] sm:$0xff] }
  0x3e   : > { %v1109_v10 = vld [vmem:[%s1568_s5 + $0x20] sm:$0xff]  ;;  %v1110_v14 = vld [vmem:[%s1568_s5 + $0x28] sm:$0xff]  ;;  %v1115_v19 = vld [vmem:[%s1568_s5 + $0x50] sm:$0xff] }
  0x3f   : > { %450 = vmatpush.bf16.msra.mxu0 %v1127_v2  ;;  %1133 = vmatpush.bf16.msra.mxu1 %v1127_v2  ;;  %v1113_v11 = vld [vmem:[%s1568_s5 + $0x40] sm:$0xff]  ;;  %v1114_v15 = vld [vmem:[%s1568_s5 + $0x48] sm:$0xff]  ;;  %v1119_v20 = vld [vmem:[%s1568_s5 + $0x70] sm:$0xff] }
  0x40   : > { %1134 = vmatpush.bf16.msra.mxu2 %v1127_v2  ;;  %1135 = vmatpush.bf16.msra.mxu3 %v1127_v2  ;;  %v1117_v12 = vld [vmem:[%s1568_s5 + $0x60] sm:$0xff]  ;;  %v1118_v16 = vld [vmem:[%s1568_s5 + $0x68] sm:$0xff]  ;;  %v1108_v21 = vld [vmem:[%s1568_s5 + $0x18] sm:$0xff] }
  0x41   : > { %v1112_v22 = vld [vmem:[%s1568_s5 + $0x38] sm:$0xff] }
  0x42   : > { %v1116_v23 = vld [vmem:[%s1568_s5 + $0x58] sm:$0xff] }
  0x43   : > { %451 = vmatpush.bf16.msra.mxu0 %v1126_v3  ;;  %1136 = vmatpush.bf16.msra.mxu1 %v1126_v3  ;;  %v1120_v24 = vld [vmem:[%s1568_s5 + $0x78] sm:$0xff] }
  0x44   : > { %1137 = vmatpush.bf16.msra.mxu2 %v1126_v3  ;;  %1138 = vmatpush.bf16.msra.mxu3 %v1126_v3 }
  0x47   : > { %452 = vmatpush.bf16.msra.mxu0 %v1125_v4  ;;  %1139 = vmatpush.bf16.msra.mxu1 %v1125_v4 }
  0x48   : > { %1140 = vmatpush.bf16.msra.mxu2 %v1125_v4  ;;  %1141 = vmatpush.bf16.msra.mxu3 %v1125_v4 }
  0x4b   : > { %453 = vmatpush.bf16.msra.mxu0 %v1124_v5  ;;  %1142 = vmatpush.bf16.msra.mxu1 %v1124_v5 }
  0x4c   : > { %1143 = vmatpush.bf16.msra.mxu2 %v1124_v5  ;;  %1144 = vmatpush.bf16.msra.mxu3 %v1124_v5 }
  0x4f   : > { %454 = vmatpush.bf16.msra.mxu0 %v1123_v6  ;;  %1145 = vmatpush.bf16.msra.mxu1 %v1123_v6 }
  0x50   : > { %1146 = vmatpush.bf16.msra.mxu2 %v1123_v6  ;;  %1147 = vmatpush.bf16.msra.mxu3 %v1123_v6 }
  0x53   : > { %455 = vmatpush.bf16.msra.mxu0 %v1122_v7  ;;  %1148 = vmatpush.bf16.msra.mxu1 %v1122_v7 }
  0x54   : > { %1149 = vmatpush.bf16.msra.mxu2 %v1122_v7  ;;  %1150 = vmatpush.bf16.msra.mxu3 %v1122_v7 }
  0x57   : > { %456 = vmatpush.bf16.msra.mxu0 %v1121_v8  ;;  %1151 = vmatpush.bf16.msra.mxu1 %v1121_v8 }
  0x58   : > { %1152 = vmatpush.bf16.msra.mxu2 %v1121_v8  ;;  %1153 = vmatpush.bf16.msra.mxu3 %v1121_v8 }
  0x5a   : > { %457 = vmatmul.bf16.vlgmr.msra.gmra.mxu0 %v1105_v9  ;;  %477 = vmatmul.bf16.vlgmr.msra.gmra.mxu1 %v1109_v10 }
  0x5b   : > { %497 = vmatmul.bf16.vlgmr.msra.gmra.mxu2 %v1113_v11  ;;  %517 = vmatmul.bf16.vlgmr.msra.gmra.mxu3 %v1117_v12 }
  0x6a   : > { %462 = vmatmul.bf16.gmra.mxu0 %v1106_v13  ;;  %482 = vmatmul.bf16.gmra.mxu1 %v1110_v14 }
  0x6b   : > { %502 = vmatmul.bf16.gmra.mxu2 %v1114_v15  ;;  %522 = vmatmul.bf16.gmra.mxu3 %v1118_v16 }
  0x7a   : > { %467 = vmatmul.bf16.gmra.mxu0 %v1107_v17  ;;  %487 = vmatmul.bf16.gmra.mxu1 %v1111_v18 }
  0x7b   : > { %507 = vmatmul.bf16.gmra.mxu2 %v1115_v19  ;;  %527 = vmatmul.bf16.gmra.mxu3 %v1119_v20 }
  0x8a   : > { %472 = vmatmul.bf16.gmra.mxu0 %v1108_v21  ;;  %492 = vmatmul.bf16.gmra.mxu1 %v1112_v22 }
  0x8b   : > { %512 = vmatmul.bf16.gmra.mxu2 %v1116_v23  ;;  %532 = vmatmul.bf16.gmra.mxu3 %v1120_v24 }
  0xd7   : > { %v1599_v25 = vpop.f32.mrf.mxu0  ;;  %v1601_v26 = vpop.f32.mrf.mxu1 }
  0xde   : > { %v1603_v27 = vpop.f32.mrf.mxu2  ;;  %v1605_v28 = vpop.f32.mrf.mxu3 }
  0xdf   : > { %v1607_v29 = vpop.f32.mrf.mxu0  ;;  %v1609_v30 = vpop.f32.mrf.mxu1 }
  0xe6   : > { %v1611_v31 = vpop.f32.mrf.mxu2  ;;  %v1613_v32 = vpop.f32.mrf.mxu3 }
  0xe7   : > { %v1615_v33 = vpop.f32.mrf.mxu0  ;;  %v1617_v34 = vpop.f32.mrf.mxu1 }
  0xee   : > { %v1619_v35 = vpop.f32.mrf.mxu2  ;;  %v1621_v36 = vpop.f32.mrf.mxu3 }
  0xef   : > { %v1623_v37 = vpop.f32.mrf.mxu0  ;;  %v1625_v38 = vpop.f32.mrf.mxu1 }
  0xf6   : > { %v1627_v39 = vpop.f32.mrf.mxu2  ;;  %v1629_v40 = vpop.f32.mrf.mxu3 }
  0xf7   : > { %v1631_v41 = vpop.f32.mrf.mxu0  ;;  %v1633_v42 = vpop.f32.mrf.mxu1 }
  0xfe   : > { %v1635_v43 = vpop.f32.mrf.mxu2  ;;  %v1637_v44 = vpop.f32.mrf.mxu3 }
  0xff   : > { %v1639_v45 = vpop.f32.mrf.mxu0  ;;  %v1641_v46 = vpop.f32.mrf.mxu1 }
 0x106   : > { %v1643_v47 = vpop.f32.mrf.mxu2  ;;  %v1645_v48 = vpop.f32.mrf.mxu3 }
 0x107   : > { %v1647_v49 = vpop.f32.mrf.mxu0  ;;  %v1649_v50 = vpop.f32.mrf.mxu1 }
 0x10e   : > { %v1651_v51 = vpop.f32.mrf.mxu2  ;;  %v1653_v52 = vpop.f32.mrf.mxu3 }
 0x10f   : > { %v1655_v53 = vpop.f32.mrf.mxu0  ;;  %v1657_v54 = vpop.f32.mrf.mxu1 }
 0x112   : > { %540 = sbr.rel (%p1097_p1) target bundleno = 358 (0x166), region = 52 }
 0x116   : > { %v1659_v55 = vpop.f32.mrf.mxu2  ;;  %v1661_v56 = vpop.f32.mrf.mxu3 }
 0x117   : > { %v542_v57 = vadd.f32 %v1607_v29, %v1599_v25  ;;  %653 = vst [vmem:[%s1581_s21] sm:$0xff] %v1599_v25  ;;  %v582_v58 = vmul.f32 %v1599_v25, %v1599_v25  ;;  %v583_v59 = vmul.f32 %v1607_v29, %v1607_v29  ;;  %v584_v61 = vmul.f32 %v1615_v33, %v1615_v33 }
 0x118   : > { %654 = vst [vmem:[%s1581_s21 + $0x8] sm:$0xff] %v1607_v29  ;;  %v585_v63 = vmul.f32 %v1623_v37, %v1623_v37  ;;  %v586_v2 = vmul.f32 %v1631_v41, %v1631_v41  ;;  %v587_v5 = vmul.f32 %v1639_v45, %v1639_v45  ;;  %v588_v8 = vmul.f32 %v1647_v49, %v1647_v49 }
 0x119   : > { %v543_v60 = vadd.f32 %v542_v57, %v1615_v33  ;;  %655 = vst [vmem:[%s1581_s21 + $0x10] sm:$0xff] %v1615_v33  ;;  %v614_v0 = vadd.f32 %v583_v59, %v582_v58  ;;  %v589_v11 = vmul.f32 %v1655_v53, %v1655_v53  ;;  %v590_v14 = vmul.f32 %v1601_v26, %v1601_v26 }
 0x11a   : > { %656 = vst [vmem:[%s1581_s21 + $0x18] sm:$0xff] %v1623_v37  ;;  %v591_v17 = vmul.f32 %v1609_v30, %v1609_v30  ;;  %v592_v20 = vmul.f32 %v1617_v34, %v1617_v34  ;;  %v593_v23 = vmul.f32 %v1625_v38, %v1625_v38  ;;  %v594_v58 = vmul.f32 %v1633_v42, %v1633_v42 }
 0x11b   : > { %v544_v62 = vadd.f32 %v543_v60, %v1623_v37  ;;  %657 = vst [vmem:[%s1581_s21 + $0x20] sm:$0xff] %v1631_v41  ;;  %v615_v3 = vadd.f32 %v614_v0, %v584_v61  ;;  %v595_v61 = vmul.f32 %v1641_v46, %v1641_v46  ;;  %v596_v0 = vmul.f32 %v1649_v50, %v1649_v50 }
 0x11c   : > { %658 = vst [vmem:[%s1581_s21 + $0x28] sm:$0xff] %v1639_v45 }
 0x11d   : > { %v545_v1 = vadd.f32 %v544_v62, %v1631_v41  ;;  %659 = vst [vmem:[%s1581_s21 + $0x30] sm:$0xff] %v1647_v49  ;;  %v616_v6 = vadd.f32 %v615_v3, %v585_v63  ;;  %v597_v3 = vmul.f32 %v1657_v54, %v1657_v54 }
 0x11e   : > { %660 = vst [vmem:[%s1581_s21 + $0x38] sm:$0xff] %v1655_v53 }
 0x11f   : > { %v546_v4 = vadd.f32 %v545_v1, %v1639_v45  ;;  %661 = vst [vmem:[%s1581_s21 + $0x40] sm:$0xff] %v1601_v26  ;;  %v617_v9 = vadd.f32 %v616_v6, %v586_v2  ;;  %v598_v6 = vmul.f32 %v1603_v27, %v1603_v27 }
 0x120   : > { %662 = vst [vmem:[%s1581_s21 + $0x48] sm:$0xff] %v1609_v30 }
 0x121   : > { %v547_v7 = vadd.f32 %v546_v4, %v1647_v49  ;;  %663 = vst [vmem:[%s1581_s21 + $0x50] sm:$0xff] %v1617_v34  ;;  %v618_v12 = vadd.f32 %v617_v9, %v587_v5  ;;  %v599_v9 = vmul.f32 %v1611_v31, %v1611_v31 }
 0x122   : > { %664 = vst [vmem:[%s1581_s21 + $0x58] sm:$0xff] %v1625_v38 }
 0x123   : > { %v548_v10 = vadd.f32 %v547_v7, %v1655_v53  ;;  %665 = vst [vmem:[%s1581_s21 + $0x60] sm:$0xff] %v1633_v42  ;;  %v619_v15 = vadd.f32 %v618_v12, %v588_v8  ;;  %v600_v12 = vmul.f32 %v1619_v35, %v1619_v35 }
 0x124   : > { %666 = vst [vmem:[%s1581_s21 + $0x68] sm:$0xff] %v1641_v46 }
 0x125   : > { %v549_v13 = vadd.f32 %v548_v10, %v1601_v26  ;;  %667 = vst [vmem:[%s1581_s21 + $0x70] sm:$0xff] %v1649_v50  ;;  %v620_v18 = vadd.f32 %v619_v15, %v589_v11  ;;  %v601_v15 = vmul.f32 %v1627_v39, %v1627_v39 }
 0x126   : > { %668 = vst [vmem:[%s1581_s21 + $0x78] sm:$0xff] %v1657_v54 }
 0x127   : > { %v550_v16 = vadd.f32 %v549_v13, %v1609_v30  ;;  %669 = vst [vmem:[%s1581_s21 + $0x80] sm:$0xff] %v1603_v27  ;;  %v621_v21 = vadd.f32 %v620_v18, %v590_v14  ;;  %v602_v18 = vmul.f32 %v1635_v43, %v1635_v43 }
 0x128   : > { %670 = vst [vmem:[%s1581_s21 + $0x88] sm:$0xff] %v1611_v31 }
 0x129   : > { %v551_v19 = vadd.f32 %v550_v16, %v1617_v34  ;;  %671 = vst [vmem:[%s1581_s21 + $0x90] sm:$0xff] %v1619_v35  ;;  %v622_v24 = vadd.f32 %v621_v21, %v591_v17  ;;  %v603_v21 = vmul.f32 %v1643_v47, %v1643_v47 }
 0x12a   : > { %672 = vst [vmem:[%s1581_s21 + $0x98] sm:$0xff] %v1627_v39 }
 0x12b   : > { %v552_v22 = vadd.f32 %v551_v19, %v1625_v38  ;;  %673 = vst [vmem:[%s1581_s21 + $0xa0] sm:$0xff] %v1635_v43  ;;  %v623_v59 = vadd.f32 %v622_v24, %v592_v20  ;;  %v604_v24 = vmul.f32 %v1651_v51, %v1651_v51 }
 0x12c   : > { %674 = vst [vmem:[%s1581_s21 + $0xa8] sm:$0xff] %v1643_v47 }
 0x12d   : > { %v553_v57 = vadd.f32 %v552_v22, %v1633_v42  ;;  %675 = vst [vmem:[%s1581_s21 + $0xb0] sm:$0xff] %v1651_v51  ;;  %v624_v62 = vadd.f32 %v623_v59, %v593_v23  ;;  %v605_v59 = vmul.f32 %v1659_v55, %v1659_v55 }
 0x12e   : > { %676 = vst [vmem:[%s1581_s21 + $0xb8] sm:$0xff] %v1659_v55 }
 0x12f   : > { %v554_v60 = vadd.f32 %v553_v57, %v1641_v46  ;;  %677 = vst [vmem:[%s1581_s21 + $0xc0] sm:$0xff] %v1605_v28  ;;  %v625_v1 = vadd.f32 %v624_v62, %v594_v58  ;;  %v606_v62 = vmul.f32 %v1605_v28, %v1605_v28 }
 0x130   : > { %678 = vst [vmem:[%s1581_s21 + $0xc8] sm:$0xff] %v1613_v32 }
 0x131   : > { %v555_v63 = vadd.f32 %v554_v60, %v1649_v50  ;;  %679 = vst [vmem:[%s1581_s21 + $0xd0] sm:$0xff] %v1621_v36  ;;  %v626_v4 = vadd.f32 %v625_v1, %v595_v61  ;;  %v607_v1 = vmul.f32 %v1613_v32, %v1613_v32 }
 0x132   : > { %680 = vst [vmem:[%s1581_s21 + $0xd8] sm:$0xff] %v1629_v40 }
 0x133   : > { %v556_v2 = vadd.f32 %v555_v63, %v1657_v54  ;;  %681 = vst [vmem:[%s1581_s21 + $0xe0] sm:$0xff] %v1637_v44  ;;  %v627_v7 = vadd.f32 %v626_v4, %v596_v0  ;;  %v608_v4 = vmul.f32 %v1621_v36, %v1621_v36 }
 0x134   : > { %682 = vst [vmem:[%s1581_s21 + $0xe8] sm:$0xff] %v1645_v48 }
 0x135   : > { %v557_v5 = vadd.f32 %v556_v2, %v1603_v27  ;;  %683 = vst [vmem:[%s1581_s21 + $0xf0] sm:$0xff] %v1653_v52  ;;  %v628_v10 = vadd.f32 %v627_v7, %v597_v3  ;;  %v609_v7 = vmul.f32 %v1629_v40, %v1629_v40 }
 0x136   : > { %684 = vst [vmem:[%s1581_s21 + $0xf8] sm:$0xff] %v1661_v56 }
 0x137   : > { %v558_v8 = vadd.f32 %v557_v5, %v1611_v31  ;;  %v629_v13 = vadd.f32 %v628_v10, %v598_v6  ;;  %v610_v10 = vmul.f32 %v1637_v44, %v1637_v44 }
 0x139   : > { %v559_v11 = vadd.f32 %v558_v8, %v1619_v35  ;;  %v630_v16 = vadd.f32 %v629_v13, %v599_v9  ;;  %v611_v13 = vmul.f32 %v1645_v48, %v1645_v48 }
 0x13b   : > { %v560_v14 = vadd.f32 %v559_v11, %v1627_v39  ;;  %v631_v19 = vadd.f32 %v630_v16, %v600_v12  ;;  %v612_v16 = vmul.f32 %v1653_v52, %v1653_v52 }
 0x13d   : > { %v561_v17 = vadd.f32 %v560_v14, %v1635_v43  ;;  %v632_v22 = vadd.f32 %v631_v19, %v601_v15  ;;  %v613_v19 = vmul.f32 %v1661_v56, %v1661_v56 }
 0x13f   : > { %v562_v20 = vadd.f32 %v561_v17, %v1643_v47  ;;  %v633_v57 = vadd.f32 %v632_v22, %v602_v18 }
 0x141   : > { %v563_v23 = vadd.f32 %v562_v20, %v1651_v51  ;;  %v634_v60 = vadd.f32 %v633_v57, %v603_v21 }
 0x143   : > { %v564_v58 = vadd.f32 %v563_v23, %v1659_v55  ;;  %v635_v63 = vadd.f32 %v634_v60, %v604_v24 }
 0x145   : > { %v565_v61 = vadd.f32 %v564_v58, %v1605_v28  ;;  %v636_v2 = vadd.f32 %v635_v63, %v605_v59 }
 0x147   : > { %v566_v0 = vadd.f32 %v565_v61, %v1613_v32  ;;  %v637_v5 = vadd.f32 %v636_v2, %v606_v62  ;;  %v541_v62 = vld [vmem:[#allocation2] sm:$0x1] }
 0x149   : > { %v567_v3 = vadd.f32 %v566_v0, %v1621_v36  ;;  %v638_v8 = vadd.f32 %v637_v5, %v607_v1 }
 0x14b   : > { %v568_v6 = vadd.f32 %v567_v3, %v1629_v40  ;;  %v639_v11 = vadd.f32 %v638_v8, %v608_v4  ;;  %v581_v4 = vld [vmem:[#allocation3] sm:$0x1] }
 0x14d   : > { %v569_v9 = vadd.f32 %v568_v6, %v1637_v44  ;;  %v640_v14 = vadd.f32 %v639_v11, %v609_v7 }
 0x14f   : > { %v570_v12 = vadd.f32 %v569_v9, %v1645_v48  ;;  %v641_v17 = vadd.f32 %v640_v14, %v610_v10 }
 0x151   : > { %v571_v15 = vadd.f32 %v570_v12, %v1653_v52  ;;  %v642_v20 = vadd.f32 %v641_v17, %v611_v13 }
 0x153   : > { %v572_v18 = vadd.f32 %v571_v15, %v1661_v56  ;;  %v643_v22 = vadd.f32 %v642_v20, %v612_v16 }
 0x155   : > { %v573_v21 = vrot.slane %v572_v18, 4  ;;  %v644_v24 = vadd.f32 %v643_v22, %v613_v19 }
 0x157   : > { %v574_v23 = vadd.f32 %v573_v21, %v572_v18  ;;  %v645_v58 = vrot.slane %v644_v24, 4 }
 0x159   : > { %v575_v57 = vrot.slane %v574_v23, 2  ;;  %v646_v60 = vadd.f32 %v645_v58, %v644_v24 }
 0x15b   : > { %v576_v59 = vadd.f32 %v575_v57, %v574_v23  ;;  %v647_v63 = vrot.slane %v646_v60, 2 }
 0x15d   : > { %v577_v61 = vrot.slane %v576_v59, 1  ;;  %v648_v1 = vadd.f32 %v647_v63, %v646_v60 }
 0x15f   : > { %v578_v0 = vadd.f32 %v577_v61, %v576_v59  ;;  %v649_v3 = vrot.slane %v648_v1, 1 }
 0x161   : > { %v579_v2 = vadd.f32 %v578_v0, %v541_v62  ;;  %v650_v5 = vadd.f32 %v649_v3, %v648_v1 }
 0x163   : > { %580 = vst [vmem:[#allocation2] sm:$0x1] %v579_v2  ;;  %v651_v6 = vadd.f32 %v650_v5, %v581_v4 }
 0x165   : > { %652 = vst [vmem:[#allocation3] sm:$0x1] %v651_v6 }
 0x166 PF: > { %p1098_p4 = scmp.ne.s32.totalorder %s1401_s19, 1 }
 0x168   : > { %688 = sbr.rel (%p1098_p4) target bundleno = 436 (0x1b4), region = 56 }
 0x16d   : > { %v689_v7 = vld [vmem:[#allocation2] sm:$0x1]  ;;  %v691_v8 = vld [vmem:[#allocation3] sm:$0x1] }
 0x16e   : > { %v690_v9 = vmul.f32 0.001953125, %v689_v7  ;;  %v692_v10 = vmul.f32 0.001953125, %v691_v8  ;;  %v707_v22 = vld [vmem:[%s2043_s2] sm:$0x1] }
 0x170   : > { %v693_v11 = vmul.f32 %v690_v9, %v690_v9  ;;  %v1825_v20 = vperm.slane %v690_v9, 0 }
 0x172   : > { %v694_v12 = vsub.f32 %v692_v10, %v693_v11  ;;  %v712_v24 = vsub.f32 %v1599_v25, %v1825_v20  ;;  %v713_v57 = vsub.f32 %v1607_v29, %v1825_v20  ;;  %v714_v59 = vsub.f32 %v1615_v33, %v1825_v20  ;;  %v1853_v33 = vld [vmem:[%s2044_s3] ss:$0 sm:$0xff] }
 0x173   : > { %v715_v60 = vsub.f32 %v1623_v37, %v1825_v20  ;;  %v716_v61 = vsub.f32 %v1631_v41, %v1825_v20  ;;  %v717_v62 = vsub.f32 %v1639_v45, %v1825_v20  ;;  %v718_v63 = vsub.f32 %v1647_v49, %v1825_v20 }
 0x174   : > { %v695_v13 = vmax.f32 %v694_v12, 0.0  ;;  %v719_v25 = vsub.f32 %v1655_v53, %v1825_v20  ;;  %v720_v29 = vsub.f32 %v1601_v26, %v1825_v20  ;;  %v721_v37 = vsub.f32 %v1609_v30, %v1825_v20 }
 0x175   : > { %v722_v41 = vsub.f32 %v1617_v34, %v1825_v20  ;;  %v723_v45 = vsub.f32 %v1625_v38, %v1825_v20  ;;  %v724_v49 = vsub.f32 %v1633_v42, %v1825_v20  ;;  %v725_v26 = vsub.f32 %v1641_v46, %v1825_v20 }
 0x176   : > { %v696_v14 = vadd.f32 1e-05, %v695_v13  ;;  %v726_v53 = vsub.f32 %v1649_v50, %v1825_v20  ;;  %v727_v1 = vsub.f32 %v1657_v54, %v1825_v20  ;;  %v728_v9 = vsub.f32 %v1603_v27, %v1825_v20 }
 0x177   : > { %v729_v10 = vsub.f32 %v1611_v31, %v1825_v20 }
 0x178   : > { %1249 = vrsqrt.f32 %v696_v14  ;;  %vm703_vm0 = vweird.f32 %v696_v14 }
 0x17e   : > { %v1250_v15 = vpop.eup %1249 }
 0x17f   : > { %v698_v16 = vmul.f32 %v1250_v15, %v696_v14  ;;  %vm704_vm1 = vweird.f32 %v1250_v15 }
 0x180   : > { %vm705_vm2 = vmor %vm703_vm0, %vm704_vm1 }
 0x181   : > { %v699_v17 = vmul.f32 %v1250_v15, %v698_v16 }
 0x183   : > { %v700_v18 = vmul.f32 0.5, %v699_v17 }
 0x185   : > { %v701_v19 = vsub.f32 1.5, %v700_v18  ;;  %v730_v18 = vsub.f32 %v1619_v35, %v1825_v20 }
 0x187   : > { %v702_v21 = vmul.f32 %v1250_v15, %v701_v19 }
 0x189   : > { %v706_v23 = vsel %vm705_vm2, %v1250_v15, %v702_v21 }
 0x18a   : > { %v708_v58 = vmul.f32 %v707_v22, %v706_v23 }
 0x18c   : > { %v1848_v0 = vperm.slane %v708_v58, 0 }
 0x18e   : > { %v747_v30 = vmul.f32 %v1848_v0, %v712_v24  ;;  %v748_v2 = vmul.f32 %v1848_v0, %v713_v57  ;;  %v749_v34 = vmul.f32 %v1848_v0, %v714_v59  ;;  %v750_v38 = vmul.f32 %v1848_v0, %v715_v60 }
 0x18f   : > { %v751_v3 = vmul.f32 %v1848_v0, %v716_v61  ;;  %v752_v42 = vmul.f32 %v1848_v0, %v717_v62  ;;  %v753_v46 = vmul.f32 %v1848_v0, %v718_v63  ;;  %v754_v4 = vmul.f32 %v1848_v0, %v719_v25 }
 0x190   : > { %v783_v50 = vadd.f32 %v1853_v33, %v747_v30  ;;  %v784_v54 = vadd.f32 %v1853_v33, %v748_v2  ;;  %v785_v5 = vadd.f32 %v1853_v33, %v749_v34  ;;  %v786_v6 = vadd.f32 %v1853_v33, %v750_v38 }
 0x191   : > { %v787_v7 = vadd.f32 %v1853_v33, %v751_v3  ;;  %v788_v8 = vadd.f32 %v1853_v33, %v752_v42  ;;  %v789_v14 = vadd.f32 %v1853_v33, %v753_v46  ;;  %v790_v17 = vadd.f32 %v1853_v33, %v754_v4 }
 0x192   : > { %v815_v11 = vmax.f32 %v783_v50, 0.0  ;;  %v816_v12 = vmax.f32 %v784_v54, 0.0  ;;  %v817_v13 = vmax.f32 %v785_v5, 0.0  ;;  %v818_v15 = vmax.f32 %v786_v6, 0.0 }
 0x193   : > { %v819_v16 = vmax.f32 %v787_v7, 0.0  ;;  %v755_v27 = vmul.f32 %v1848_v0, %v720_v29  ;;  %v756_v19 = vmul.f32 %v1848_v0, %v721_v37  ;;  %v757_v31 = vmul.f32 %v1848_v0, %v722_v41 }
 0x194   : > { %847 = vst [vmem:[%s1581_s21] sm:$0xff] %v815_v11  ;;  %v758_v21 = vmul.f32 %v1848_v0, %v723_v45  ;;  %v820_v22 = vmax.f32 %v788_v8, 0.0  ;;  %v759_v23 = vmul.f32 %v1848_v0, %v724_v49  ;;  %v760_v24 = vmul.f32 %v1848_v0, %v725_v26 }
 0x195   : > { %848 = vst [vmem:[%s1581_s21 + $0x8] sm:$0xff] %v816_v12  ;;  %v761_v57 = vmul.f32 %v1848_v0, %v726_v53  ;;  %v821_v35 = vmax.f32 %v789_v14, 0.0  ;;  %v791_v58 = vadd.f32 %v1853_v33, %v755_v27  ;;  %v792_v59 = vadd.f32 %v1853_v33, %v756_v19 }
 0x196   : > { %849 = vst [vmem:[%s1581_s21 + $0x10] sm:$0xff] %v817_v13  ;;  %v793_v60 = vadd.f32 %v1853_v33, %v757_v31  ;;  %v822_v61 = vmax.f32 %v790_v17, 0.0  ;;  %v794_v62 = vadd.f32 %v1853_v33, %v758_v21  ;;  %v762_v63 = vmul.f32 %v1848_v0, %v727_v1 }
 0x197   : > { %850 = vst [vmem:[%s1581_s21 + $0x18] sm:$0xff] %v818_v15  ;;  %v731_v25 = vsub.f32 %v1627_v39, %v1825_v20  ;;  %v823_v29 = vmax.f32 %v791_v58, 0.0  ;;  %v795_v37 = vadd.f32 %v1853_v33, %v759_v23  ;;  %v732_v41 = vsub.f32 %v1635_v43, %v1825_v20 }
 0x198   : > { %851 = vst [vmem:[%s1581_s21 + $0x20] sm:$0xff] %v819_v16  ;;  %v733_v45 = vsub.f32 %v1643_v47, %v1825_v20  ;;  %v824_v49 = vmax.f32 %v792_v59, 0.0  ;;  %v796_v26 = vadd.f32 %v1853_v33, %v760_v24  ;;  %v797_v53 = vadd.f32 %v1853_v33, %v761_v57 }
 0x199   : > { %852 = vst [vmem:[%s1581_s21 + $0x28] sm:$0xff] %v820_v22  ;;  %v734_v39 = vsub.f32 %v1651_v51, %v1825_v20  ;;  %v825_v1 = vmax.f32 %v793_v60, 0.0  ;;  %v763_v30 = vmul.f32 %v1848_v0, %v728_v9  ;;  %v764_v43 = vmul.f32 %v1848_v0, %v729_v10 }
 0x19a   : > { %853 = vst [vmem:[%s1581_s21 + $0x30] sm:$0xff] %v821_v35  ;;  %v765_v2 = vmul.f32 %v1848_v0, %v730_v18  ;;  %v826_v47 = vmax.f32 %v794_v62, 0.0  ;;  %v798_v34 = vadd.f32 %v1853_v33, %v762_v63  ;;  %v766_v38 = vmul.f32 %v1848_v0, %v731_v25 }
 0x19b   : > { %854 = vst [vmem:[%s1581_s21 + $0x38] sm:$0xff] %v822_v61  ;;  %v735_v3 = vsub.f32 %v1659_v55, %v1825_v20  ;;  %v827_v51 = vmax.f32 %v795_v37, 0.0  ;;  %v799_v42 = vadd.f32 %v1853_v33, %v763_v30  ;;  %v767_v46 = vmul.f32 %v1848_v0, %v732_v41 }
 0x19c   : > { %855 = vst [vmem:[%s1581_s21 + $0x40] sm:$0xff] %v823_v29  ;;  %v736_v4 = vsub.f32 %v1605_v28, %v1825_v20  ;;  %v828_v50 = vmax.f32 %v796_v26, 0.0  ;;  %v800_v54 = vadd.f32 %v1853_v33, %v764_v43  ;;  %v768_v5 = vmul.f32 %v1848_v0, %v733_v45 }
 0x19d   : > { %856 = vst [vmem:[%s1581_s21 + $0x48] sm:$0xff] %v824_v49  ;;  %v737_v55 = vsub.f32 %v1613_v32, %v1825_v20  ;;  %v829_v6 = vmax.f32 %v797_v53, 0.0  ;;  %v801_v7 = vadd.f32 %v1853_v33, %v765_v2  ;;  %v769_v8 = vmul.f32 %v1848_v0, %v734_v39 }
 0x19e   : > { %857 = vst [vmem:[%s1581_s21 + $0x50] sm:$0xff] %v825_v1  ;;  %v738_v28 = vsub.f32 %v1621_v36, %v1825_v20  ;;  %v830_v9 = vmax.f32 %v798_v34, 0.0  ;;  %v802_v10 = vadd.f32 %v1853_v33, %v766_v38  ;;  %v770_v11 = vmul.f32 %v1848_v0, %v735_v3 }
 0x19f   : > { %858 = vst [vmem:[%s1581_s21 + $0x58] sm:$0xff] %v826_v47  ;;  %v739_v32 = vsub.f32 %v1629_v40, %v1825_v20  ;;  %v831_v12 = vmax.f32 %v799_v42, 0.0  ;;  %v803_v13 = vadd.f32 %v1853_v33, %v767_v46  ;;  %v771_v14 = vmul.f32 %v1848_v0, %v736_v4 }
 0x1a0   : > { %859 = vst [vmem:[%s1581_s21 + $0x60] sm:$0xff] %v827_v51  ;;  %v740_v36 = vsub.f32 %v1637_v44, %v1825_v20  ;;  %v832_v15 = vmax.f32 %v800_v54, 0.0  ;;  %v804_v16 = vadd.f32 %v1853_v33, %v768_v5  ;;  %v772_v17 = vmul.f32 %v1848_v0, %v737_v55 }
 0x1a1   : > { %860 = vst [vmem:[%s1581_s21 + $0x68] sm:$0xff] %v828_v50  ;;  %v741_v40 = vsub.f32 %v1645_v48, %v1825_v20  ;;  %v833_v18 = vmax.f32 %v801_v7, 0.0  ;;  %v805_v27 = vadd.f32 %v1853_v33, %v769_v8  ;;  %v773_v19 = vmul.f32 %v1848_v0, %v738_v28 }
 0x1a2   : > { %861 = vst [vmem:[%s1581_s21 + $0x70] sm:$0xff] %v829_v6  ;;  %v742_v44 = vsub.f32 %v1653_v52, %v1825_v20  ;;  %v834_v31 = vmax.f32 %v802_v10, 0.0  ;;  %v806_v21 = vadd.f32 %v1853_v33, %v770_v11  ;;  %v774_v22 = vmul.f32 %v1848_v0, %v739_v32 }
 0x1a3   : > { %862 = vst [vmem:[%s1581_s21 + $0x78] sm:$0xff] %v830_v9  ;;  %v743_v48 = vsub.f32 %v1661_v56, %v1825_v20  ;;  %v835_v23 = vmax.f32 %v803_v13, 0.0  ;;  %v807_v24 = vadd.f32 %v1853_v33, %v771_v14  ;;  %v775_v57 = vmul.f32 %v1848_v0, %v740_v36 }
 0x1a4   : > { %863 = vst [vmem:[%s1581_s21 + $0x80] sm:$0xff] %v831_v12  ;;  %v836_v52 = vmax.f32 %v804_v16, 0.0  ;;  %v808_v35 = vadd.f32 %v1853_v33, %v772_v17  ;;  %v776_v58 = vmul.f32 %v1848_v0, %v741_v40  ;;  %v837_v59 = vmax.f32 %v805_v27, 0.0 }
 0x1a5   : > { %864 = vst [vmem:[%s1581_s21 + $0x88] sm:$0xff] %v832_v15  ;;  %v809_v56 = vadd.f32 %v1853_v33, %v773_v19  ;;  %v777_v20 = vmul.f32 %v1848_v0, %v742_v44  ;;  %v838_v60 = vmax.f32 %v806_v21, 0.0  ;;  %v810_v61 = vadd.f32 %v1853_v33, %v774_v22 }
 0x1a6   : > { %865 = vst [vmem:[%s1581_s21 + $0x90] sm:$0xff] %v833_v18  ;;  %v778_v62 = vmul.f32 %v1848_v0, %v743_v48  ;;  %v839_v63 = vmax.f32 %v807_v24, 0.0  ;;  %v811_v25 = vadd.f32 %v1853_v33, %v775_v57  ;;  %v840_v29 = vmax.f32 %v808_v35, 0.0 }
 0x1a7   : > { %866 = vst [vmem:[%s1581_s21 + $0x98] sm:$0xff] %v834_v31  ;;  %v812_v37 = vadd.f32 %v1853_v33, %v776_v58  ;;  %v841_v41 = vmax.f32 %v809_v56, 0.0  ;;  %v813_v45 = vadd.f32 %v1853_v33, %v777_v20  ;;  %v842_v0 = vmax.f32 %v810_v61, 0.0 }
 0x1a8   : > { %867 = vst [vmem:[%s1581_s21 + $0xa0] sm:$0xff] %v835_v23  ;;  %v814_v49 = vadd.f32 %v1853_v33, %v778_v62  ;;  %v843_v26 = vmax.f32 %v811_v25, 0.0 }
 0x1a9   : > { %868 = vst [vmem:[%s1581_s21 + $0xa8] sm:$0xff] %v836_v52  ;;  %v844_v53 = vmax.f32 %v812_v37, 0.0  ;;  %v845_v39 = vmax.f32 %v813_v45, 0.0 }
 0x1aa   : > { %869 = vst [vmem:[%s1581_s21 + $0xb0] sm:$0xff] %v837_v59  ;;  %v846_v1 = vmax.f32 %v814_v49, 0.0 }
 0x1ab   : > { %870 = vst [vmem:[%s1581_s21 + $0xb8] sm:$0xff] %v838_v60 }
 0x1ac   : > { %871 = vst [vmem:[%s1581_s21 + $0xc0] sm:$0xff] %v839_v63 }
 0x1ad   : > { %872 = vst [vmem:[%s1581_s21 + $0xc8] sm:$0xff] %v840_v29 }
 0x1ae   : > { %873 = vst [vmem:[%s1581_s21 + $0xd0] sm:$0xff] %v841_v41 }
 0x1af   : > { %874 = vst [vmem:[%s1581_s21 + $0xd8] sm:$0xff] %v842_v0 }
 0x1b0   : > { %875 = vst [vmem:[%s1581_s21 + $0xe0] sm:$0xff] %v843_v26 }
 0x1b1   : > { %876 = vst [vmem:[%s1581_s21 + $0xe8] sm:$0xff] %v844_v53 }
 0x1b2   : > { %877 = vst [vmem:[%s1581_s21 + $0xf0] sm:$0xff] %v845_v39 }
 0x1b3   : > { %878 = vst [vmem:[%s1581_s21 + $0xf8] sm:$0xff] %v846_v1 }
 0x1b4 PF: > { %s1129_s11 = sshll.u32 %s1397_s18, 8  ;;  %s892_s7 = sshll.u32 %s1581_s21, 4  ;;  %s893_s7 = int_to_ptr.vmem [resolvable:$true] %s892_s7 }
 0x1b5   : > { %s891_s30 = scalar_lea.hbm %s2045_s4, %s1129_s11  ;;  %s880_s14 = scalar_lea.sflag [#allocation6], %s1564_s13 }
 0x1b6   : > { %s894_s8 = sshll.u32 %s891_s30, 4  ;;  %s1331_s18 = scalar_lea.hbm %s2045_s4, 512  ;;  %s895_s8 = int_to_ptr.hbm [resolvable:$true] %s894_s8 }
 0x1b7   : > { %s1325_s26 = sshra.s32 %s895_s8, 4  ;;  %s1326_s26 = int_to_ptr.hbm [resolvable:$true] %s1325_s26 }
 0x1b8   : > { %s1327_s10 = scalar_lea.hbm %s1326_s26, 256  ;;  %p1332_p3 = scmp.lt.s32.totalorder %s1326_s26, %s2045_s4 }
 0x1b9   : > { %p1328_p12 = scmp.ne.s32.totalorder %s1326_s26, %s1327_s10  ;;  %p1333_p5 = scmp.lt.s32.totalorder %s1331_s18, %s1327_s10 }
 0x1bb   : > { %p1329_p13 = pnand %p1328_p12, %p1541_p7  ;;  %p1334_p9 = por %p1333_p5, %p1332_p3 }
 0x1bd   : > { %p1330_p0 = pneg %p1329_p13 }
 0x1bf   : > { %p1335_p2 = pnand %p1334_p9, %p1330_p0 }
 0x1c1   : > { %1338 = shalt.err (!%p1335_p2)
}
 0x1c2   : > { %s1419_s13 = smov 128   ;;  %s1420_s21 = smov 8  }
 0x1c3   : > { %1160 = dma.vmem_to_hbm [thread:$0]  (%p1541_p7), %s893_s7, 4096, %s895_s8, %s880_s14, %s1419_s13, %s1419_s13, %s1420_s21  }
 0x1c4 PF: > { %p1177_p8 = scmp.ge.s32.totalorder %s1413_s22, 2  ;;  %s909_s25 = sand.u32 1, %s1385_s15  }
 0x1c5   : > { %s910_s27 = scalar_lea.sflag [#allocation6], %s909_s25 }
 0x1c6   : > { %p1171_p10 = pnand %p1177_p8, %p1505_p6 }
 0x1c8   : > { %p1172_p11 = pneg %p1171_p10 }
 0x1ca   : > { %1380 = dma.done.wait (%p1172_p11), %s910_s27, 4096  }
 0x1cb   : > { %1382 = vsyncadd (%p1172_p11), %s910_s27, 4294963200  ;;  %s21_s22 = sadd.s32 1, %s1413_s22   ;;  %s2064_s19 = sld [smem:[#allocation13_spill]] }
 0x1cc   : > { %p18_p1 = scmp.ge.s32.totalorder %s21_s22, 6   ;;  %s2065_s24 = sld [smem:[#allocation14_spill]] }
 0x1cd   : > { %s2066_s21 = sld [smem:[#allocation15_spill]]  ;;  %s2067_s15 = smov %s1389_s16 }
 0x1ce   : > { %s2068_s16 = smov %s1393_s17  ;;  %s2069_s17 = smov %s1548_s29 }
 0x1cf   : > { %s2070_s18 = smov %s1405_s20  ;;  %20 = sbr.rel (!%p18_p1) target bundleno = 10 (0xa), region = 97 }
 0x1d2   : > { %s2071_s20 = smov %s2065_s24 }
 0x1d4   :  { %916 = vsyncpa [#allocation5], 1 }
 0x1d5   :  { %918 = vsyncpa [#allocation5 + $0x1], 1 }
 0x1d6   :  { %919 = vsyncpa [#allocation8], 1 }
 0x1d7   :  { %920 = vsyncpa [#allocation6], 1 }
 0x1d8   :  { %922 = vsyncpa [#allocation6 + $0x1], 1 }

</bundles_post_ra>
